<compile_context>
chip_gen: v5e
topology: v5e:2x2
jax: 0.10.0
libtpu: 0.0.40
codegen_flags: <defaults>
</compile_context>

<pallas_src>
import functools

import jax
import jax.numpy as jnp
from jax.experimental import pallas as pl
from jax.experimental.pallas import tpu as pltpu


def _round_up(n: int, m: int) -> int:
    return ((n + m - 1) // m) * m


def _rmsnorm_kernel(gamma_ref, x_ref, o_ref, *, eps, hidden):
    # gamma_ref: (1,) scalar in SMEM; x_ref / o_ref: (TR, H) tiles in VMEM.
    # The block's last dim equals the full hidden size, so the logical tile
    # holds exactly `hidden` real columns: the axis=-1 reduction is exact and
    # no lane mask is required (Mosaic masks physical lane padding internally).
    xsq = jnp.square(x_ref[...].astype(jnp.float32))
    ms = jnp.sum(xsq, axis=-1, keepdims=True) * (1.0 / hidden)        # (TR, 1)
    # eps is added OUTSIDE the sqrt, matching the PyTorch reference.
    scale = gamma_ref[0] / (jnp.sqrt(ms) + eps)                       # (TR, 1)
    # Second read of the tile for the write-out (avoids keeping a full fp32
    # copy of the tile live across the reduction).
    o_ref[...] = (x_ref[...].astype(jnp.float32) * scale).astype(o_ref.dtype)


def _vmem_capacity_bytes() -> int:
    try:
        return int(pltpu.get_tpu_info().vmem_capacity_bytes)
    except Exception:
        # Minimum across target generations (v7x has 64 MiB / TensorCore);
        # safe everywhere, only slightly shrinks tiles on v5e/v6e.
        return 64 * 1024 * 1024


def _pick_row_tile(rows: int, h: int, dtype_bytes: int, vmem_cap: int) -> int:
    """Row tile TR (multiple of 8) such that:
       - double-buffered in/out tiles + fp32 temporaries fit in ~1/3 of VMEM,
       - TR <= 512 (larger tiles don't buy more HBM bandwidth),
       - the grid has >= 8 steps when rows allow (DMA/compute overlap),
       - the step count is even when > 1 (balanced across v7x's 2 TCs)."""
    budget = vmem_cap // 3
    # per-row bytes: 2x double-buffered input + 2x output in the I/O dtype,
    # plus one fp32 temporary row (conservative).
    per_row = h * (4 * dtype_bytes + 4)
    tr_vmem = max(8, (budget // max(per_row, 1)) // 8 * 8)
    tr_cap = min(tr_vmem, 512)

    # Desired number of grid steps.
    steps = max(pl.cdiv(rows, tr_cap), 1)
    steps = max(steps, min(8, pl.cdiv(rows, 8)))   # deepen the pipeline
    if steps > 1 and steps % 2 == 1:
        steps += 1                                  # even split for 2 TCs

    tr = max(8, _round_up(pl.cdiv(rows, steps), 8))
    return min(tr, tr_cap)


def rmsnorm(x: jax.Array, gamma: jax.Array, eps: float = 1e-5) -> jax.Array:
    """RMSNorm over the last axis with a scalar learnable gamma."""
    orig_shape = x.shape
    H = orig_shape[-1]
    x2d = x.reshape(-1, H)
    R = x2d.shape[0]

    dtype_bytes = jnp.dtype(x.dtype).itemsize
    vmem_cap = _vmem_capacity_bytes()

    TR = _pick_row_tile(R, H, dtype_bytes, vmem_cap)
    grid = (pl.cdiv(R, TR),)   # partial last block handled by Pallas

    gamma_s = jnp.asarray(gamma, dtype=jnp.float32).reshape((1,))
    kernel = functools.partial(_rmsnorm_kernel, eps=float(eps), hidden=H)

    vmem_limit = min(int(vmem_cap * 7 // 10), vmem_cap)

    out2d = pl.pallas_call(
        kernel,
        out_shape=jax.ShapeDtypeStruct((R, H), x.dtype),
        grid_spec=pltpu.PrefetchScalarGridSpec(
            num_scalar_prefetch=0,
            grid=grid,
            in_specs=[
                pl.BlockSpec(memory_space=pltpu.MemorySpace.SMEM),   # gamma
                pl.BlockSpec((TR, H), lambda i: (i, 0)),             # x row tile
            ],
            out_specs=pl.BlockSpec((TR, H), lambda i: (i, 0)),
        ),
        compiler_params=pltpu.CompilerParams(
            dimension_semantics=("parallel",),
            vmem_limit_bytes=vmem_limit,
        ),
    )(gamma_s, x2d)

    return out2d.reshape(orig_shape)


def rmsnorm_ref(x, gamma, eps=1e-5):
    xf = x.astype(jnp.float32)
    norms = jnp.sqrt(jnp.mean(xf * xf, axis=-1, keepdims=True))
    return (xf * gamma / (norms + eps)).astype(x.dtype)


if __name__ == "__main__":
    key = jax.random.PRNGKey(0)
    eps = 1e-5
    # Deterministic parameter init, matching nn.Parameter(torch.ones(1)).
    gamma = jnp.ones((1,), dtype=jnp.float32)

    # Primary small test consistent with the module's (batch, seq, hidden) use.
    batch, seq, hidden = 2, 8, 32
    x = jax.random.normal(key, (batch, seq, hidden), dtype=jnp.float32)
    out = jax.block_until_ready(rmsnorm(x, gamma, eps))
    ref = rmsnorm_ref(x, gamma, eps)
    assert out.shape == x.shape
    assert jnp.allclose(out, ref, atol=1e-5, rtol=1e-5), "mismatch vs reference"

    # Ragged shape (rows not a multiple of the tile, hidden not lane-aligned)
    # to exercise the partial-last-block and full-H-block paths.
    x2 = jax.random.normal(jax.random.PRNGKey(1), (3, 5, 48), dtype=jnp.float32)
    out2 = jax.block_until_ready(rmsnorm(x2, gamma, eps))
    ref2 = rmsnorm_ref(x2, gamma, eps)
    assert out2.shape == x2.shape
    assert jnp.allclose(out2, ref2, atol=1e-5, rtol=1e-5), "ragged mismatch"

    print("KERNEL_OK")
</pallas_src>

<mosaic_0001>
module attributes {stable_mosaic.version = 11 : i64} {
  func.func @_rmsnorm_kernel(%arg0: i32, %arg1: memref<1xf32, #tpu.memory_space<smem>>, %arg2: memref<8x32xf32, #tpu.memory_space<vmem>>, %arg3: memref<8x32xf32, #tpu.memory_space<vmem>>) attributes {dimension_semantics = [#tpu.dimension_semantics<parallel>], iteration_bounds = array<i64: 2>, scalar_prefetch = 0 : i64, scratch_operands = 0 : i64, tpu.core_type = #tpu.core_type<tc>, window_params = [{transform_indices = @transform_0, window_bounds = array<i64: 1>}, {transform_indices = @transform_1, window_bounds = array<i64: 8, 32>}, {transform_indices = @transform_2, window_bounds = array<i64: 8, 32>}]} {
    %c0 = arith.constant 0 : index
    %c0_0 = arith.constant 0 : index
    %0 = vector.load %arg2[%c0, %c0_0] : memref<8x32xf32, #tpu.memory_space<vmem>>, vector<8x32xf32>
    %1 = arith.mulf %0, %0 : vector<8x32xf32>
    %cst = arith.constant dense<0.000000e+00> : vector<8xf32>
    %2 = vector.multi_reduction <add>, %1, %cst [1] : vector<8x32xf32> to vector<8xf32>
    %3 = vector.shape_cast %2 : vector<8xf32> to vector<8x1xf32>
    %cst_1 = arith.constant 3.125000e-02 : f32
    %4 = vector.broadcast %cst_1 : f32 to vector<8x1xf32>
    %5 = arith.mulf %3, %4 : vector<8x1xf32>
    %c0_2 = arith.constant 0 : index
    %6 = memref.load %arg1[%c0_2] : memref<1xf32, #tpu.memory_space<smem>>
    %7 = math.sqrt %5 : vector<8x1xf32>
    %cst_3 = arith.constant 9.99999974E-6 : f32
    %8 = vector.broadcast %cst_3 : f32 to vector<8x1xf32>
    %9 = arith.addf %7, %8 : vector<8x1xf32>
    %10 = vector.broadcast %6 : f32 to vector<8x1xf32>
    %11 = arith.divf %10, %9 : vector<8x1xf32>
    %c0_4 = arith.constant 0 : index
    %c0_5 = arith.constant 0 : index
    %12 = vector.load %arg2[%c0_4, %c0_5] : memref<8x32xf32, #tpu.memory_space<vmem>>, vector<8x32xf32>
    %13 = vector.broadcast %11 : vector<8x1xf32> to vector<8x32xf32>
    %14 = arith.mulf %12, %13 : vector<8x32xf32>
    %c0_6 = arith.constant 0 : index
    %c0_7 = arith.constant 0 : index
    %15 = vector.load %arg3[%c0_6, %c0_7] : memref<8x32xf32, #tpu.memory_space<vmem>>, vector<8x32xf32>
    tpu.vector_store %arg3[%c0_6, %c0_7], %14 {strides = array<i32>} : memref<8x32xf32, #tpu.memory_space<vmem>>, vector<8x32xf32>,
    return
  }
  func.func @transform_0(%arg0: i32) -> i32 {
    %c0_i32 = arith.constant 0 : i32
    %c0_i32_0 = arith.constant 0 : i32
    return %c0_i32 : i32
  }
  func.func @transform_1(%arg0: i32) -> (i32, i32) {
    %c0_i32 = arith.constant 0 : i32
    %c0_i32_0 = arith.constant 0 : i32
    return %arg0, %c0_i32 : i32, i32
  }
  func.func @transform_2(%arg0: i32) -> (i32, i32) {
    %c0_i32 = arith.constant 0 : i32
    %c0_i32_0 = arith.constant 0 : i32
    return %arg0, %c0_i32 : i32, i32
  }
}

</mosaic_0001>

<bundles_post_ra>
// kernel: tpu_custom_call.1
= control target key start
LH: loop header
LB: loop body
LE: loop exit
PB: predicated region body
PF: predicated region fallthrough
CT: control target
= control target key end

     0   :  { %s598_s0 = inlined_call_operand.<no memory space> [shape: f32[1], index: 0, kind: input, shape index: {}]   ;;  %s599_s1 = inlined_call_operand.hbm [shape: f32[16,32], index: 1, kind: input, shape index: {}]   ;;  %s600_s2 = inlined_call_operand.hbm [shape: f32[16,32], index: 2, kind: output, shape index: {}]  }
   0x1   :  { %7 = sst [smem:[#allocation2]] %s598_s0 }
   0x2   :  { %8 = vsyncpa [#allocation4], 0 }
   0x3   :  { %10 = vsyncpa [#allocation4 + $0x1], 0 }
   0x4   :  { %11 = vsyncpa [#allocation5], 0 }
   0x5   :  { %13 = vsyncpa [#allocation5 + $0x1], 0  ;;  %s465_s11 = smov 0   ;;  %s467_s12 = smov 0  }
   0x6   :  { %s469_s13 = smov 0   ;;  %s471_s14 = smov 0  }
   0x7 LB: > { %s486_s0 = sadd.s32 4294967295, %s445_s14   ;;  %s287_s15 = sadd.s32 4294967294, %s445_s14   ;;  %s445_s14 = sphi %s471_s14, %s610_s14   ;;  %s441_s13 = sphi %s469_s13, %s609_s13   ;;  %s437_s12 = sphi %s467_s12, %s608_s12   ;;  %s433_s11 = sphi %s465_s11, %s607_s11  }
   0x8   : > { %s490_s16 = sadd.s32 1, %s445_s14   ;;  %s47_s17 = sadd.s32 1, %s441_s13 }
   0x9   : > { %s44_s18 = ssub.s32 %s445_s14, %s490_s16  ;;  %p54_p0 = scmp.ne.s32.totalorder %s441_s13, %s437_s12 }
   0xa   : > { %p45_p1 = scmp.eq.s32.totalorder %s44_s18, 0  ;;  %p55_p2 = scmp.eq.s32.totalorder %s445_s14, 0 }
   0xb   : > { %p60_p3 = scmp.ne.s32.totalorder %s437_s12, %s433_s11  ;;  %p61_p4 = scmp.eq.s32.totalorder %s486_s0, 0 }
   0xc   : > { %s502_s19 = scalar_select %p45_p1, %s441_s13, %s47_s17  }
   0xd   : > { %p504_p5 = por %p55_p2, %p54_p0  ;;  %p508_p6 = por %p61_p4, %p60_p3 }
   0xe   : > { %p84_p7 = scmp.eq.s32.totalorder %s486_s0, 1  ;;  %p90_p8 = scmp.eq.s32.totalorder %s287_s15, 1 }
   0xf   : > { %p311_p10 = scmp.lt.s32.totalorder %s445_s14, 2  ;;  %s113_s24 = sand.u32 1, %s441_s13  }
  0x10   : > { %p515_p11 = por %p84_p7, %p54_p0  ;;  %p519_p12 = por %p90_p8, %p60_p3 }
  0x11   : > { %s291_s25 = sshll.u32 %s445_s14, 3  ;;  %s290_s26 = sshll.u32 %s113_s24, 3 }
  0x12   : > { %s121_s29 = scalar_lea.hbm %s599_s1, %s291_s25  ;;  %s117_s3 = scalar_lea.vmem [#allocation3], %s290_s26 }
  0x13   : > { %s123_s30 = sshll.u32 %s121_s29, 4  ;;  %s125_s4 = sshll.u32 %s117_s3, 4  ;;  %s124_s30 = int_to_ptr.hbm [resolvable:$true] %s123_s30  ;;  %s126_s4 = int_to_ptr.vmem [resolvable:$true] %s125_s4 }
  0x14   : > { %p530_p13 = pnand %p311_p10, %p504_p5  ;;  %p292_p0 = scmp.ge.s32.totalorder %s445_s14, 1 }
  0x15   : > { %p130_p1 = scmp.lt.s32.totalorder %s445_s14, 3  ;;  %s114_s6 = scalar_lea.sflag [#allocation4], %s113_s24 }
  0x16   : > { %s349_s7 = sshra.s32 %s124_s30, 4  ;;  %p353_p3 = pneg %p530_p13  ;;  %s350_s7 = int_to_ptr.hbm [resolvable:$true] %s349_s7 }
  0x17   : > { %s351_s8 = scalar_lea.hbm %s350_s7, 8  ;;  %s356_s15 = scalar_lea.hbm %s599_s1, 16 }
  0x18   : > { %p352_p2 = scmp.ne.s32.totalorder %s350_s7, %s351_s8  ;;  %p357_p5 = scmp.lt.s32.totalorder %s350_s7, %s599_s1 }
  0x19   : > { %p358_p8 = scmp.lt.s32.totalorder %s356_s15, %s351_s8 }
  0x1a   : > { %p354_p4 = pnand %p353_p3, %p352_p2 }
  0x1b   : > { %p359_p10 = por %p358_p8, %p357_p5 }
  0x1c   : > { %p355_p7 = pneg %p354_p4 }
  0x1e   : > { %p360_p9 = pnand %p359_p10, %p355_p7 }
  0x20   : > { %363 = shalt.err (!%p360_p9)
}
  0x21   : > { %306 = dma.hbm_to_vmem [thread:$0]  (!%p530_p13), %s124_s30, 128, %s126_s4, %s114_s6  }
  0x22   : > { %p131_p2 = pnand %p292_p0, %p130_p1 }
  0x23   : > { %s551_s20 = sand.u32 (!%p131_p2), 1, %s437_s12  }
  0x24   : > { %134 = sbr.rel (%p131_p2) target bundleno = 211 (0xd3), region = 28  ;;  %s293_s24 = sshll.u32 (!%p131_p2), %s551_s20, 3 }
  0x25   : > { %s137_s25 = scalar_lea.sflag (!%p131_p2), [#allocation4], %s551_s20  ;;  %s140_s26 = scalar_lea.vmem (!%p131_p2), [#allocation3], %s293_s24 }
  0x29   : > { %424 = dma.done.wait (%p508_p6), %s137_s25, 128  }
  0x2a   : > { %426 = vsyncadd (%p508_p6), %s137_s25, 4294967168  ;;  %v162_v0 = vld [vmem:[%s140_s26] sm:$0xff]  ;;  %vm164_vm0 = vcmask 261120   ;;  %s169_s21 = sld [smem:[#allocation2]]  ;;  %s296_s27 = sshll.u32 %s486_s0, 3 }
  0x2b   : > { %v163_v1 = vmul.f32 %v162_v0, %v162_v0  ;;  %s212_s30 = scalar_lea.hbm %s600_s2, %s296_s27  ;;  %s161_s3 = scalar_lea.vmem [#allocation6], %s293_s24 }
  0x2c   : > { %s214_s0 = sshll.u32 %s161_s3, 4  ;;  %s216_s4 = sshll.u32 %s212_s30, 4  ;;  %s215_s0 = int_to_ptr.vmem [resolvable:$true] %s214_s0  ;;  %s217_s4 = int_to_ptr.hbm [resolvable:$true] %s216_s4 }
  0x2d   : > { %v165_v2 = vsel %vm164_vm0, %v163_v1, 0.0  ;;  %s202_s5 = scalar_lea.sflag [#allocation5], %s551_s20  ;;  %s393_s6 = sshra.s32 %s217_s4, 4  ;;  %s394_s6 = int_to_ptr.hbm [resolvable:$true] %s393_s6 }
  0x2e   : > { %166 = vadd.xlane.f32.xlu0 %v165_v2  ;;  %s395_s7 = scalar_lea.hbm %s394_s6, 8  ;;  %s399_s10 = scalar_lea.hbm %s600_s2, 16 }
  0x2f   : > { %p396_p6 = scmp.ne.s32.totalorder %s394_s6, %s395_s7  ;;  %p400_p0 = scmp.lt.s32.totalorder %s394_s6, %s600_s2 }
  0x30   : > { %v183_v23 = vstv %s169_s21  ;;  %p401_p1 = scmp.lt.s32.totalorder %s399_s10, %s395_s7 }
  0x31   : > { %p397_p9 = pnand %p396_p6, %p515_p11 }
  0x32   : > { %p402_p3 = por %p401_p1, %p400_p0 }
  0x33   : > { %p398_p13 = pneg %p397_p9 }
  0x35   : > { %p403_p4 = pnand %p402_p3, %p398_p13 }
  0xa1   : > { %v167_v3 = vpop.xlane.xlu0 %166 }
  0xa2   : > { %v168_v4 = vmul.f32 0.03125, %v167_v3 }
  0xa4   : > { %345 = vrsqrt.f32 %v168_v4  ;;  %vm177_vm1 = vcmp.eq.f32.partialorder %v168_v4, inf  ;;  %v180_v12 = vand.u32 2147483648, %v168_v4  ;;  %vm179_vm2 = vcmp.eq.f32.partialorder %v168_v4, 0.0 }
  0xaa   : > { %v346_v5 = vpop.eup %345 }
  0xab   : > { %v171_v6 = vmul.f32 %v346_v5, %v168_v4 }
  0xad   : > { %v172_v7 = vmul.f32 %v346_v5, %v171_v6 }
  0xaf   : > { %v173_v8 = vmul.f32 0.5, %v172_v7 }
  0xb1   : > { %v174_v9 = vsub.f32 1.5, %v173_v8 }
  0xb3   : > { %v175_v10 = vmul.f32 %v346_v5, %v174_v9 }
  0xb5   : > { %v176_v11 = vmul.f32 %v175_v10, %v168_v4 }
  0xb7   : > { %v178_v13 = vsel %vm177_vm1, %v168_v4, %v176_v11 }
  0xb8   : > { %v181_v14 = vsel %vm179_vm2, %v180_v12, %v178_v13 }
  0xb9   : > { %v182_v15 = vadd.f32 1e-05, %v181_v14 }
  0xbb   : > { %347 = vrcp.f32 %v182_v15  ;;  %v195_v19 = vand.u32 2147483648, %v182_v15  ;;  %v193_v21 = vand.u32 2147483647, %v182_v15  ;;  %vm189_vm4 = vweird.f32 %v182_v15 }
  0xbd   : > { %v196_v24 = vor.u32 1.1754944e-38, %v195_v19  ;;  %vm194_vm6 = vcmp.eq.f32.partialorder %v193_v21, 8.507059e+37 }
  0xc1   : > { %v348_v16 = vpop.eup %347 }
  0xc2   : > { %v185_v17 = vmul.f32 %v348_v16, %v182_v15  ;;  %vm190_vm3 = vweird.f32 %v348_v16 }
  0xc3   : > { %vm191_vm5 = vmor %vm189_vm4, %vm190_vm3 }
  0xc4   : > { %v186_v18 = vsub.f32 1.0, %v185_v17 }
  0xc6   : > { %v187_v20 = vmul.f32 %v348_v16, %v186_v18 }
  0xc8   : > { %v188_v22 = vadd.f32 %v348_v16, %v187_v20 }
  0xca   : > { %v192_v25 = vsel %vm191_vm5, %v348_v16, %v188_v22 }
  0xcb   : > { %v197_v26 = vsel %vm194_vm6, %v196_v24, %v192_v25 }
  0xcc   : > { %v198_v27 = vmul.f32 %v197_v26, %v183_v23 }
  0xce   : > { %v199_v28 = vmul.f32 %v198_v27, %v162_v0 }
  0xd0   : > { %200 = vst.msk [vmem:[%s161_s3] sm:$0xff] %vm164_vm0, %v199_v28 }
  0xd1   : > { %406 = shalt.err (!%p403_p4)
}
  0xd2   : > { %301 = dma.vmem_to_hbm [thread:$0]  (%p515_p11), %s215_s0, 128, %s217_s4, %s202_s5  }
  0xd3 PF: > { %s228_s18 = sand.u32 1, %s433_s11   ;;  %p606_p7 = scmp.ge.s32.totalorder %s445_s14, 2 }
  0xd4   : > { %s229_s20 = scalar_lea.sflag [#allocation5], %s228_s18 }
  0xd5   : > { %p308_p5 = pnand %p606_p7, %p519_p12 }
  0xd7   : > { %p309_p8 = pneg %p308_p5 }
  0xd9   : > { %428 = dma.done.wait (%p309_p8), %s229_s20, 128  }
  0xda   : > { %430 = vsyncadd (%p309_p8), %s229_s20, 4294967168  ;;  %p16_p10 = scmp.ge.s32.totalorder %s490_s16, 4   ;;  %s607_s11 = smov %s437_s12 }
  0xdb   : > { %s608_s12 = smov %s441_s13  ;;  %s609_s13 = smov %s502_s19 }
  0xdc   : > { %s610_s14 = smov %s490_s16  ;;  %18 = sbr.rel (!%p16_p10) target bundleno = 7 (0x7), region = 73 }
  0xe1   :  { %235 = vsyncpa [#allocation4], 1 }
  0xe2   :  { %237 = vsyncpa [#allocation4 + $0x1], 1 }
  0xe3   :  { %238 = vsyncpa [#allocation5], 1 }
  0xe4   :  { %240 = vsyncpa [#allocation5 + $0x1], 1 }

</bundles_post_ra>
